<compile_context>
chip_gen: v7x
topology: tpu7x:2x2x1
jax: 0.10.0
libtpu: 0.0.40
codegen_flags: <defaults>
</compile_context>

<pallas_src>
import jax
import jax.numpy as jnp
from jax.experimental import pallas as pl
from jax.experimental.pallas import tpu as pltpu

DROPOUT_P = 0.4


def _ensemble_kernel(x_ref, mask_ref, wf_ref, bf_ref, wm2_ref, bm2_ref, o_ref):
    """Fused EnsembleModel forward for one batch tile.

    x_ref    : (tb, ts+news+state)        packed branch inputs (lane-dense)
    mask_ref : (tb, meta_hidden)          inverted-dropout mask (ones in eval)
    wf_ref   : (ts+news+state, hidden)    block_diag(w1,w2,w3) @ wm1  (pre-fused)
    bf_ref   : (1, hidden)                cat(b1,b2,b3) @ wm1 + bm1   (pre-fused)
    wm2_ref  : (hidden, meta_out)
    bm2_ref  : (1, meta_out)
    o_ref    : (tb, meta_out)
    """
    f32 = jnp.float32
    # sub-models + torch.cat + first meta Linear collapsed into one MXU matmul
    h = jnp.dot(x_ref[...], wf_ref[...], preferred_element_type=f32) + bf_ref[...]
    h = jnp.maximum(h, 0.0)                      # ReLU
    h = h * mask_ref[...]                        # Dropout(0.4), inverted mask
    o_ref[...] = (jnp.dot(h, wm2_ref[...], preferred_element_type=f32)
                  + bm2_ref[...])


def fuse_params(params):
    """Fold the frozen linear sub-models + feature concat into the first meta
    layer (done once, offline).  Keeps weights in f32 to match the torch module
    exactly; casting wf/wm2 to bf16 is a further ~2x MXU win on v6e/v7x."""
    w1, w2, w3 = params["w1"], params["w2"], params["w3"]
    d1, d2 = w1.shape[1], w2.shape[1]
    wm1 = params["wm1"]
    wf = jnp.concatenate(
        [w1 @ wm1[:d1], w2 @ wm1[d1:d1 + d2], w3 @ wm1[d1 + d2:]], axis=0)
    b_cat = jnp.concatenate([params["b1"], params["b2"], params["b3"]], axis=1)
    bf = b_cat @ wm1 + params["bm1"]
    return {"wf": wf.astype(jnp.float32), "bf": bf.astype(jnp.float32),
            "wm2": params["wm2"].astype(jnp.float32),
            "bm2": params["bm2"].astype(jnp.float32)}


def ensemble_forward(fused, x_ts, x_news, x_state, *, key=None, training=False,
                     batch_tile=512):
    """Runs the fused EnsembleModel forward pass as one Pallas kernel.

    batch_tile=512 keeps the double-buffered per-step footprint well under the
    32 MiB scoped VMEM on v6e/v7x (and under 16 MiB on v5e).
    """
    batch = x_ts.shape[0]
    x_all = jnp.concatenate([x_ts, x_news, x_state], axis=1).astype(jnp.float32)
    feat_in = x_all.shape[1]
    meta_hidden = fused["wf"].shape[1]
    meta_out = fused["wm2"].shape[1]

    if training:
        if key is None:
            raise ValueError("training=True requires a PRNG key for dropout")
        keep = jax.random.bernoulli(key, 1.0 - DROPOUT_P, (batch, meta_hidden))
        mask = keep.astype(jnp.float32) * (1.0 / (1.0 - DROPOUT_P))
    else:
        mask = jnp.ones((batch, meta_hidden), jnp.float32)

    # Batch tile: full batch for small inputs, otherwise a multiple-of-8 tile.
    tb = batch if batch <= batch_tile else batch_tile
    grid = (pl.cdiv(batch, tb),)

    in_specs = [
        pl.BlockSpec((tb, feat_in), lambda i: (i, 0)),          # x_all
        pl.BlockSpec((tb, meta_hidden), lambda i: (i, 0)),      # dropout mask
        pl.BlockSpec((feat_in, meta_hidden), lambda i: (0, 0)), # wf (resident)
        pl.BlockSpec((1, meta_hidden), lambda i: (0, 0)),       # bf (resident)
        pl.BlockSpec((meta_hidden, meta_out), lambda i: (0, 0)),# wm2 (resident)
        pl.BlockSpec((1, meta_out), lambda i: (0, 0)),          # bm2 (resident)
    ]
    out_spec = pl.BlockSpec((tb, meta_out), lambda i: (i, 0))

    return pl.pallas_call(
        _ensemble_kernel,
        out_shape=jax.ShapeDtypeStruct((batch, meta_out), jnp.float32),
        grid=grid,
        in_specs=in_specs,
        out_specs=out_spec,
        compiler_params=pltpu.CompilerParams(
            dimension_semantics=("parallel",),       # shards grid on v7x's 2 TCs
            vmem_limit_bytes=32 * 1024 * 1024),      # explicit, safe on 64 MiB v7x
    )(x_all, mask, fused["wf"], fused["bf"], fused["wm2"], fused["bm2"])


def init_params(key, ts_dim, news_dim, state_dim, d1, d2, d3, meta_hidden, meta_out):
    """Deterministic synthetic parameters (no checkpoint loading)."""
    ks = jax.random.split(key, 8)
    meta_in = d1 + d2 + d3

    def lin(kw, fan_in, fan_out):
        scale = 1.0 / jnp.sqrt(jnp.float32(fan_in))
        return jax.random.uniform(kw, (fan_in, fan_out), jnp.float32, -scale, scale)

    return {
        # frozen sub-model stubs
        "w1": lin(ks[0], ts_dim, d1),    "b1": jnp.zeros((1, d1), jnp.float32),
        "w2": lin(ks[1], news_dim, d2),  "b2": jnp.zeros((1, d2), jnp.float32),
        "w3": lin(ks[2], state_dim, d3), "b3": jnp.zeros((1, d3), jnp.float32),
        # meta_classifier: Linear(meta_in, 64) -> ReLU -> Dropout(0.4) -> Linear(64, meta_out)
        "wm1": lin(ks[3], meta_in, meta_hidden),
        "bm1": jax.random.uniform(ks[4], (1, meta_hidden), jnp.float32,
                                  -1.0 / jnp.sqrt(jnp.float32(meta_in)),
                                  1.0 / jnp.sqrt(jnp.float32(meta_in))),
        "wm2": lin(ks[5], meta_hidden, meta_out),
        "bm2": jax.random.uniform(ks[6], (1, meta_out), jnp.float32,
                                  -1.0 / jnp.sqrt(jnp.float32(meta_hidden)),
                                  1.0 / jnp.sqrt(jnp.float32(meta_hidden))),
    }


if __name__ == "__main__":
    key = jax.random.PRNGKey(0)
    k_param, k_ts, k_news, k_state, k_drop = jax.random.split(key, 5)

    # Small shapes consistent with the module's forward.
    batch = 2
    ts_dim, news_dim, state_dim = 16, 32, 8    # per-branch input feature sizes
    d1 = d2 = d3 = 8                           # per-branch (frozen head) output sizes
    meta_hidden = 64
    meta_out = 4                               # meta_output_size
    # meta_input_size = d1 + d2 + d3 = 24

    params = init_params(k_param, ts_dim, news_dim, state_dim,
                         d1, d2, d3, meta_hidden, meta_out)
    fused = fuse_params(params)

    x_ts = jax.random.normal(k_ts, (batch, ts_dim), jnp.float32)
    x_news = jax.random.normal(k_news, (batch, news_dim), jnp.float32)
    x_state = jax.random.normal(k_state, (batch, state_dim), jnp.float32)

    # Pure-JAX reference of the original (unfused) module.
    def ref(params, x_ts, x_news, x_state, mask=None):
        o1 = x_ts @ params["w1"] + params["b1"]
        o2 = x_news @ params["w2"] + params["b2"]
        o3 = x_state @ params["w3"] + params["b3"]
        c = jnp.concatenate([o1, o2, o3], axis=1)
        h = jnp.maximum(c @ params["wm1"] + params["bm1"], 0.0)
        if mask is not None:
            h = h * mask
        return h @ params["wm2"] + params["bm2"]

    # Eval mode (dropout = identity).
    out_eval = ensemble_forward(fused, x_ts, x_news, x_state, training=False)
    jax.block_until_ready(out_eval)
    expected_eval = ref(params, x_ts, x_news, x_state)
    assert out_eval.shape == (batch, meta_out)
    assert jnp.allclose(out_eval, expected_eval, atol=1e-4, rtol=1e-4)

    # Training mode (stochastic dropout, mask generated in the wrapper).
    out_train = ensemble_forward(fused, x_ts, x_news, x_state,
                                 key=k_drop, training=True)
    jax.block_until_ready(out_train)
    keep = jax.random.bernoulli(k_drop, 1.0 - DROPOUT_P, (batch, meta_hidden))
    mask_ref = keep.astype(jnp.float32) * (1.0 / (1.0 - DROPOUT_P))
    expected_train = ref(params, x_ts, x_news, x_state, mask_ref)
    assert out_train.shape == (batch, meta_out)
    assert jnp.allclose(out_train, expected_train, atol=1e-4, rtol=1e-4)

    print("KERNEL_OK")
</pallas_src>

<mosaic_0001>
module attributes {stable_mosaic.version = 11 : i64} {
  func.func @_ensemble_kernel(%arg0: i32, %arg1: memref<2x56xf32, #tpu.memory_space<vmem>>, %arg2: memref<2x64xf32, #tpu.memory_space<vmem>>, %arg3: memref<56x64xf32, #tpu.memory_space<vmem>>, %arg4: memref<1x64xf32, #tpu.memory_space<vmem>>, %arg5: memref<64x4xf32, #tpu.memory_space<vmem>>, %arg6: memref<1x4xf32, #tpu.memory_space<vmem>>, %arg7: memref<2x4xf32, #tpu.memory_space<vmem>>) attributes {dimension_semantics = [#tpu.dimension_semantics<parallel>], iteration_bounds = array<i64: 1>, scalar_prefetch = 0 : i64, scratch_operands = 0 : i64, tpu.core_type = #tpu.core_type<tc>, window_params = [{transform_indices = @transform_0, window_bounds = array<i64: 2, 56>}, {transform_indices = @transform_1, window_bounds = array<i64: 2, 64>}, {pipeline_mode = #tpu.pipeline_mode<synchronous>, transform_indices = @transform_2, window_bounds = array<i64: 56, 64>}, {pipeline_mode = #tpu.pipeline_mode<synchronous>, transform_indices = @transform_3, window_bounds = array<i64: 1, 64>}, {pipeline_mode = #tpu.pipeline_mode<synchronous>, transform_indices = @transform_4, window_bounds = array<i64: 64, 4>}, {pipeline_mode = #tpu.pipeline_mode<synchronous>, transform_indices = @transform_5, window_bounds = array<i64: 1, 4>}, {transform_indices = @transform_6, window_bounds = array<i64: 2, 4>}]} {
    %c0 = arith.constant 0 : index
    %c0_0 = arith.constant 0 : index
    %0 = vector.load %arg1[%c0, %c0_0] : memref<2x56xf32, #tpu.memory_space<vmem>>, vector<2x56xf32>
    %c0_1 = arith.constant 0 : index
    %c0_2 = arith.constant 0 : index
    %1 = vector.load %arg3[%c0_1, %c0_2] : memref<56x64xf32, #tpu.memory_space<vmem>>, vector<56x64xf32>
    %cst = arith.constant dense<0.000000e+00> : vector<2x64xf32>
    %2 = tpu.matmul %0, %1, %cst {dimension_numbers = #tpu.dot_dimension_numbers<[1], [0], [0], [1], [0, 0, 1, 1], [], []>} : vector<2x56xf32>, vector<56x64xf32>, vector<2x64xf32> -> vector<2x64xf32>
    %c0_3 = arith.constant 0 : index
    %c0_4 = arith.constant 0 : index
    %3 = vector.load %arg4[%c0_3, %c0_4] : memref<1x64xf32, #tpu.memory_space<vmem>>, vector<1x64xf32>
    %4 = vector.broadcast %3 : vector<1x64xf32> to vector<2x64xf32>
    %5 = arith.addf %2, %4 : vector<2x64xf32>
    %cst_5 = arith.constant 0.000000e+00 : f32
    %6 = vector.broadcast %cst_5 : f32 to vector<2x64xf32>
    %7 = arith.maximumf %5, %6 : vector<2x64xf32>
    %c0_6 = arith.constant 0 : index
    %c0_7 = arith.constant 0 : index
    %8 = vector.load %arg2[%c0_6, %c0_7] : memref<2x64xf32, #tpu.memory_space<vmem>>, vector<2x64xf32>
    %9 = arith.mulf %7, %8 : vector<2x64xf32>
    %c0_8 = arith.constant 0 : index
    %c0_9 = arith.constant 0 : index
    %10 = vector.load %arg5[%c0_8, %c0_9] : memref<64x4xf32, #tpu.memory_space<vmem>>, vector<64x4xf32>
    %cst_10 = arith.constant dense<0.000000e+00> : vector<2x4xf32>
    %11 = tpu.matmul %9, %10, %cst_10 {dimension_numbers = #tpu.dot_dimension_numbers<[1], [0], [0], [1], [0, 0, 1, 1], [], []>} : vector<2x64xf32>, vector<64x4xf32>, vector<2x4xf32> -> vector<2x4xf32>
    %c0_11 = arith.constant 0 : index
    %c0_12 = arith.constant 0 : index
    %12 = vector.load %arg6[%c0_11, %c0_12] : memref<1x4xf32, #tpu.memory_space<vmem>>, vector<1x4xf32>
    %13 = vector.broadcast %12 : vector<1x4xf32> to vector<2x4xf32>
    %14 = arith.addf %11, %13 : vector<2x4xf32>
    %c0_13 = arith.constant 0 : index
    %c0_14 = arith.constant 0 : index
    %15 = vector.load %arg7[%c0_13, %c0_14] : memref<2x4xf32, #tpu.memory_space<vmem>>, vector<2x4xf32>
    tpu.vector_store %arg7[%c0_13, %c0_14], %14 {strides = array<i32>} : memref<2x4xf32, #tpu.memory_space<vmem>>, vector<2x4xf32>,
    return
  }
  func.func @transform_0(%arg0: i32) -> (i32, i32) {
    %c0_i32 = arith.constant 0 : i32
    %c0_i32_0 = arith.constant 0 : i32
    return %arg0, %c0_i32 : i32, i32
  }
  func.func @transform_1(%arg0: i32) -> (i32, i32) {
    %c0_i32 = arith.constant 0 : i32
    %c0_i32_0 = arith.constant 0 : i32
    return %arg0, %c0_i32 : i32, i32
  }
  func.func @transform_2(%arg0: i32) -> (i32, i32) {
    %c0_i32 = arith.constant 0 : i32
    %c0_i32_0 = arith.constant 0 : i32
    %c0_i32_1 = arith.constant 0 : i32
    return %c0_i32, %c0_i32_0 : i32, i32
  }
  func.func @transform_3(%arg0: i32) -> (i32, i32) {
    %c0_i32 = arith.constant 0 : i32
    %c0_i32_0 = arith.constant 0 : i32
    %c0_i32_1 = arith.constant 0 : i32
    return %c0_i32, %c0_i32_0 : i32, i32
  }
  func.func @transform_4(%arg0: i32) -> (i32, i32) {
    %c0_i32 = arith.constant 0 : i32
    %c0_i32_0 = arith.constant 0 : i32
    %c0_i32_1 = arith.constant 0 : i32
    return %c0_i32, %c0_i32_0 : i32, i32
  }
  func.func @transform_5(%arg0: i32) -> (i32, i32) {
    %c0_i32 = arith.constant 0 : i32
    %c0_i32_0 = arith.constant 0 : i32
    %c0_i32_1 = arith.constant 0 : i32
    return %c0_i32, %c0_i32_0 : i32, i32
  }
  func.func @transform_6(%arg0: i32) -> (i32, i32) {
    %c0_i32 = arith.constant 0 : i32
    %c0_i32_0 = arith.constant 0 : i32
    return %arg0, %c0_i32 : i32, i32
  }
}

</mosaic_0001>

<bundles_post_ra>
// kernel: tpu_custom_call.1
= control target key start
LH: loop header
LB: loop body
LE: loop exit
PB: predicated region body
PF: predicated region fallthrough
CT: control target
= control target key end

     0   :  { %v327_v3 = vmov 0.0|0.0   ;;  %vm328_vm0 = vmmov 0   ;;  %v329_v6 = vmov 0.0   ;;  %s435_s0 = inlined_call_operand.vmem [shape: f32[2,56], index: 0, kind: input, shape index: {}]   ;;  %s436_s1 = inlined_call_operand.vmem [shape: f32[2,64], index: 1, kind: input, shape index: {}]   ;;  %s437_s2 = inlined_call_operand.vmem [shape: f32[56,64], index: 2, kind: input, shape index: {}]   ;;  %s438_s3 = inlined_call_operand.vmem [shape: f32[1,64], index: 3, kind: input, shape index: {}]   ;;  %s439_s4 = inlined_call_operand.vmem [shape: f32[64,4], index: 4, kind: input, shape index: {}]   ;;  %s440_s5 = inlined_call_operand.vmem [shape: f32[1,4], index: 5, kind: input, shape index: {}]   ;;  %s441_s6 = inlined_call_operand.hbm [shape: f32[2,4], index: 6, kind: output, shape index: {}]  }
   0x1   :  { %v25_v0 = vld [vmem:[%s437_s2] sm:$0xff]  ;;  %v26_v1 = vld [vmem:[%s437_s2 + $0x8] sm:$0xff]  ;;  %v27_v2 = vld [vmem:[%s437_s2 + $0x10] sm:$0xff]  ;;  %278 = vmatprep.subr.bf16.mxu0 %v327_v3  ;;  %256 = vmatprep.mubr.msk.f32.mxu0 %vm328_vm0, %v329_v6 }
   0x2   :  { %v279_v4 = vpack.c.bf16 %v26_v1, %v25_v0  ;;  %v28_v5 = vld [vmem:[%s437_s2 + $0x18] sm:$0xff]  ;;  %287 = vmatprep.subr.bf16.mxu1 %v327_v3  ;;  %v116_v7 = vld [vmem:[%s439_s4] sm:$0xff]  ;;  %275 = vmatprep.mubr.msk.f32.mxu1 %vm328_vm0, %v329_v6  ;;  %v117_v9 = vld [vmem:[%s439_s4 + $0x8] sm:$0xff] }
   0x3   :  { %v282_v8 = vpack.c.bf16 %v28_v5, %v27_v2  ;;  %v118_v10 = vld [vmem:[%s439_s4 + $0x10] sm:$0xff]  ;;  %v119_v11 = vld [vmem:[%s439_s4 + $0x18] sm:$0xff]  ;;  %v29_v12 = vld [vmem:[%s437_s2 + $0x20] sm:$0xff]  ;;  %v288_v14 = vpack.c.bf16 %v117_v9, %v116_v7 }
   0x4   :  { %280 = vmatpush3.bf16.msra.mxu0 %v279_v4  ;;  %v30_v13 = vld [vmem:[%s437_s2 + $0x28] sm:$0xff] }
   0x5   :  { %281 = vmatprep.subr.bf16.mxu0 %v327_v3 }
   0x6   :  { %11 = vsyncpa [#allocation3], 0  ;;  %289 = vmatpush3.bf16.msra.mxu1 %v288_v14  ;;  %v291_v15 = vpack.c.bf16 %v119_v11, %v118_v10  ;;  %v285_v16 = vpack.c.bf16 %v30_v13, %v29_v12  ;;  %v31_v17 = vld [vmem:[%s437_s2 + $0x30] sm:$0xff]  ;;  %v24_v18 = vld [vmem:[%s435_s0] sm:$0x3]  ;;  %vm39_vm1 = vcmask 457728  }
   0x7   :  { %290 = vmatprep.subr.bf16.mxu1 %v327_v3  ;;  %v120_v19 = vld [vmem:[%s439_s4 + $0x20] sm:$0xff]  ;;  %v121_v20 = vld [vmem:[%s439_s4 + $0x28] sm:$0xff]  ;;  %v122_v22 = vld [vmem:[%s439_s4 + $0x30] sm:$0xff]  ;;  %vm131_vm2 = vcmask 523264   ;;  %vm205_vm3 = vcmask 25600  }
   0x8   :  { %283 = vmatpush3.bf16.msra.mxu0 %v282_v8  ;;  %v294_v21 = vpack.c.bf16 %v121_v20, %v120_v19  ;;  %v123_v23 = vld [vmem:[%s439_s4 + $0x38] sm:$0xff]  ;;  %v221_v25 = vld [vmem:[%s438_s3] ss:$0 sm:$0xff]  ;;  %s330_s4 = smov [#allocation2]  }
   0x9   :  { %284 = vmatprep.subr.bf16.mxu0 %v327_v3  ;;  %v297_v24 = vpack.c.bf16 %v123_v23, %v122_v22  ;;  %v114_v29 = vld [vmem:[%s436_s1] sm:$0x3]  ;;  %s213_s9 = sshll.u32 %s330_s4, 4  ;;  %s214_s9 = int_to_ptr.vmem [resolvable:$true] %s213_s9 }
   0xa   :  { %292 = vmatpush3.bf16.msra.mxu1 %v291_v15  ;;  %v223_v32 = vld [vmem:[%s440_s5] ss:$0 sm:$0xff]  ;;  %s303_s3 = scalar_lea.vmem %s214_s9, 32  ;;  %p308_p1 = scmp.lt.s32.totalorder %s214_s9, %s214_s9 }
   0xb   :  { %293 = vmatprep.subr.bf16.mxu1 %v327_v3  ;;  %p304_p0 = scmp.ne.s32.totalorder %s214_s9, %s303_s3  ;;  %p309_p2 = scmp.lt.s32.totalorder %s303_s3, %s303_s3 }
   0xc   :  { %286 = vmatpush3.bf16.msra.mxu0 %v285_v16 }
   0xd   :  { %254 = vmatprep.subr.mxu0 %v329_v6  ;;  %p310_p3 = por %p309_p2, %p308_p1 }
   0xe   :  { %295 = vmatpush3.bf16.msra.mxu1 %v294_v21 }
   0xf   :  { %296 = vmatprep.subr.bf16.mxu1 %v327_v3  ;;  %p311_p4 = pnand %p310_p3, %p304_p0 }
  0x10   :  { %255 = vmatpush3.msra.mxu0 %v31_v17 }
  0x11   :  { %257 = vmatmul.mubr.msk.f32.vlgmr.msra.gmra.mrb[0].mxu0 %vm39_vm1, %v24_v18 }
  0x12   :  { %298 = vmatpush3.bf16.msra.mxu1 %v297_v24 }
  0xe4   :  { %v109_v26 = vpop.f32.mrb[0].mxu0 }
  0xe5   :  { %v110_v27 = vadd.f32 %v221_v25, %v109_v26  ;;  %v258_v28 = vpop.f32.mrb[1].mxu0 }
  0xe7   :  { %v113_v30 = vmax.f32 %v110_v27, 0.0 }
  0xe9   :  { %v115_v31 = vmul.f32 %v114_v29, %v113_v30 }
  0xeb   :  { %276 = vmatmul.mubr.msk.f32.vlgmr.msra.gmra.mrb[0].mxu1 %vm131_vm2, %v115_v31 }
 0x1be   :  { %v201_v33 = vpop.f32.mrb[0].mxu1 }
 0x1bf   :  { %v202_v34 = vadd.f32 %v223_v32, %v201_v33  ;;  %v277_v35 = vpop.f32.mrb[1].mxu1 }
 0x1c1   :  { %206 = vst.msk [vmem:[#allocation2] sm:$0x3] %vm205_vm3, %v202_v34 }
 0x1c2   :  { %314 = shalt.err (!%p311_p4)
}
 0x1c3   :  { %s315_s11 = scalar_lea.hbm %s441_s6, 32 }
 0x1c4   :  { %p316_p5 = scmp.ne.s32.totalorder %s441_s6, %s315_s11  ;;  %p319_p6 = scmp.lt.u32.totalorder %s315_s11, %s441_s6 }
 0x1c6   :  { %p321_p7 = pnand %p319_p6, %p316_p5 }
 0x1c8   :  { %324 = shalt.err (!%p321_p7)
}
 0x1c9   :  { %216 = dma.vmem_to_hbm [thread:$0]  %s214_s9, 32, %s441_s6, [#allocation3]  }
 0x1ca   :  { %325 = dma.done.wait [#allocation3], 32  }
 0x1cb   :  { %326 = vsyncadd [#allocation3], 4294967264 }
 0x1cc   :  { %220 = vsyncpa [#allocation3], 1 }

</bundles_post_ra>
